<compile_context>
chip_gen: v6e
topology: v6e:2x2x1
jax: 0.10.0
libtpu: 0.0.40
codegen_flags: <defaults>
</compile_context>

<pallas_src>
import functools
import math

import numpy as np

import jax
import jax.numpy as jnp
from jax.experimental import pallas as pl
from jax.experimental.pallas import tpu as pltpu


def _round_up(x: int, m: int) -> int:
    return ((x + m - 1) // m) * m


def _device_defaults():
    """Generation-aware (tm_max, tn_max, tk_max, vmem_limit_bytes)."""
    try:
        kind = jax.devices()[0].device_kind.lower()
    except Exception:  # pragma: no cover - CPU/interpret fallback
        kind = ""
    if ("v5 lite" in kind) or ("v5e" in kind) or ("v5lite" in kind):
        # 128 MiB physical VMEM, 16 MiB scoped default; 128x128 MXU so 128-multiples ok.
        return 256, 512, 1024, 64 * 1024 * 1024
    if "v7" in kind:
        # 64 MiB physical VMEM per TensorCore (32 MiB scoped default); keep footprint small
        # and both TCs busy.
        return 512, 1024, 512, 48 * 1024 * 1024
    # v6e / default: 128 MiB physical VMEM; tiles are 256-aligned for the 2x256 MXU.
    return 512, 1024, 1024, 64 * 1024 * 1024


# --------------------------------------------------------------------------- #
# Kernels
# --------------------------------------------------------------------------- #
def _linear_kernel_fused(x_ref, w_ref, b_ref, o_ref, *, precision):
    """f32 output: accumulate directly into the k-resident output block.

    x_ref: (tm, tk)  w_ref: (tk, tn)  b_ref: (1, tn)  o_ref: (tm, tn) f32
    """
    k = pl.program_id(2)

    @pl.when(k == 0)
    def _init():
        # Fold the bias into the accumulator init instead of a finalize add.
        o_ref[...] = jnp.broadcast_to(b_ref[...], o_ref.shape).astype(o_ref.dtype)

    o_ref[...] += jnp.dot(
        x_ref[...], w_ref[...],
        preferred_element_type=jnp.float32,
        precision=precision,
    )


def _linear_kernel_scratch(x_ref, w_ref, b_ref, o_ref, acc_ref, *, precision):
    """Non-f32 output: keep an f32 VMEM accumulator, cast once at the end."""
    k = pl.program_id(2)

    @pl.when(k == 0)
    def _init():
        acc_ref[...] = jnp.broadcast_to(b_ref[...], acc_ref.shape).astype(jnp.float32)

    acc_ref[...] += jnp.dot(
        x_ref[...], w_ref[...],
        preferred_element_type=jnp.float32,
        precision=precision,
    )

    @pl.when(k == pl.num_programs(2) - 1)
    def _finalize():
        o_ref[...] = acc_ref[...].astype(o_ref.dtype)


# --------------------------------------------------------------------------- #
# Forward wrapper
# --------------------------------------------------------------------------- #
@functools.partial(
    jax.jit,
    static_argnames=("tm_max", "tn_max", "tk", "vmem_limit_bytes",
                     "precision", "compute_dtype"),
)
def _linear_forward(x, w_t, bias2d, *, tm_max, tn_max, tk, vmem_limit_bytes,
                    precision, compute_dtype):
    """x: (..., K);  w_t: (K_pad, N) in compute dtype;  bias2d: (1, N) f32."""
    K = x.shape[-1]
    K_pad = w_t.shape[0]
    N = bias2d.shape[-1]
    lead_shape = x.shape[:-1]

    out_dtype = x.dtype  # output follows the original input dtype (f32 here)

    x2d = x.reshape(-1, K)
    M = x2d.shape[0]

    # Cast activations once (cheap vs. the repeated tile re-reads inside the kernel).
    if x2d.dtype != compute_dtype:
        x2d = x2d.astype(compute_dtype)
    # Only the contraction axis ever needs zero padding for correctness.
    if K_pad != K:
        x2d = jnp.pad(x2d, ((0, 0), (0, K_pad - K)))

    sub = 8 * 4 // np.dtype(compute_dtype).itemsize          # 8 for f32, 16 for bf16
    tm = min(tm_max, _round_up(M, sub))
    tn = N if N <= tn_max else tn_max                         # full-N block is always legal

    # Keep both "parallel" axes populated so multi-TC chips (v7x) shard the grid.
    if pl.cdiv(M, tm) * pl.cdiv(N, tn) < 2:
        tm_half = _round_up(pl.cdiv(M, 2), sub)
        if tm_half < tm:
            tm = tm_half

    grid = (pl.cdiv(M, tm), pl.cdiv(N, tn), K_pad // tk)

    if np.dtype(out_dtype) == np.dtype(jnp.float32):
        kernel = functools.partial(_linear_kernel_fused, precision=precision)
        scratch_shapes = ()
    else:
        kernel = functools.partial(_linear_kernel_scratch, precision=precision)
        scratch_shapes = (pltpu.VMEM((tm, tn), jnp.float32),)

    out = pl.pallas_call(
        kernel,
        out_shape=jax.ShapeDtypeStruct((M, N), out_dtype),
        grid_spec=pltpu.PrefetchScalarGridSpec(
            num_scalar_prefetch=0,
            grid=grid,
            in_specs=[
                pl.BlockSpec((tm, tk), lambda i, j, k: (i, k)),   # x tile
                pl.BlockSpec((tk, tn), lambda i, j, k: (k, j)),   # w_t tile
                pl.BlockSpec((1, tn), lambda i, j, k: (0, j)),    # bias tile
            ],
            out_specs=pl.BlockSpec((tm, tn), lambda i, j, k: (i, j)),
            scratch_shapes=scratch_shapes,
        ),
        compiler_params=pltpu.CompilerParams(
            dimension_semantics=("parallel", "parallel", "arbitrary"),
            vmem_limit_bytes=vmem_limit_bytes,
        ),
        cost_estimate=pl.CostEstimate(
            flops=2 * M * N * K_pad,
            transcendentals=0,
            # Truthful traffic: x is re-read once per N-tile, w once per M-tile.
            bytes_accessed=(x2d.size * x2d.dtype.itemsize * grid[1]
                            + w_t.size * w_t.dtype.itemsize * grid[0]
                            + M * N * np.dtype(out_dtype).itemsize
                            + N * 4),
        ),
    )(x2d, w_t, bias2d)

    return out.reshape(*lead_shape, N)


# --------------------------------------------------------------------------- #
# Module-equivalent wrapper (xavier_normal_ weight, zero bias)
# --------------------------------------------------------------------------- #
class PallasLinear:
    """Pallas-TPU equivalent of the PyTorch `Linear` module's forward pass."""

    def __init__(self, key, in_features, out_features, *,
                 compute_dtype=jnp.bfloat16, precision=None):
        tm_max, tn_max, tk_max, vmem = _device_defaults()

        K, N = in_features, out_features
        # Full-K block when K fits in one tile (always a legal block dim -> no x padding).
        tk = K if K <= tk_max else tk_max
        K_pad = _round_up(K, tk)

        # xavier_normal_: std = sqrt(2 / (fan_in + fan_out)); bias = zeros.
        std = math.sqrt(2.0 / (in_features + out_features))
        weight = std * jax.random.normal(key, (out_features, in_features), jnp.float32)
        bias = jnp.zeros((out_features,), jnp.float32)

        # Reference copies (PyTorch layout / dtype).
        self.weight = weight            # (out, in) f32
        self.bias = bias                # (out,)    f32
        self.in_features = in_features
        self.out_features = out_features

        # Compute copies: transpose + cast + K-pad done ONCE at init, never per call.
        w_t = weight.T.astype(compute_dtype)          # (K, N)
        if K_pad != K:
            w_t = jnp.pad(w_t, ((0, K_pad - K), (0, 0)))
        self._w_t = w_t                                # (K_pad, N) compute dtype
        self._bias2d = bias.reshape(1, N)              # f32; bias add stays in f32

        self._cfg = dict(tm_max=tm_max, tn_max=tn_max, tk=tk,
                         vmem_limit_bytes=vmem,
                         precision=precision, compute_dtype=compute_dtype)

    def __call__(self, x):
        return _linear_forward(x, self._w_t, self._bias2d, **self._cfg)


if __name__ == "__main__":
    in_features, out_features = 32, 64
    batch, seq = 2, 8

    key = jax.random.PRNGKey(0)
    k_w, k_x = jax.random.split(key)
    x = jax.random.normal(k_x, (batch, seq, in_features), jnp.float32)

    # Plain-JAX reference (PyTorch nn.Linear semantics).
    lin_f32 = PallasLinear(k_w, in_features, out_features,
                           compute_dtype=jnp.float32,
                           precision=jax.lax.Precision.HIGHEST)
    y_ref = jnp.einsum("bsk,nk->bsn", x, lin_f32.weight) + lin_f32.bias

    # 1) f32-fidelity path: explicit HIGHEST precision on the MXU.
    y32 = lin_f32(x)
    jax.block_until_ready(y32)
    assert y32.shape == (batch, seq, out_features)
    assert y32.dtype == jnp.float32
    assert jnp.allclose(y32, y_ref, atol=1e-5, rtol=1e-5)

    # 2) bf16 fast path (MXU-native operands, f32 accumulation + f32 bias add).
    lin_bf16 = PallasLinear(k_w, in_features, out_features,
                            compute_dtype=jnp.bfloat16)
    y16 = lin_bf16(x)
    jax.block_until_ready(y16)
    assert y16.shape == (batch, seq, out_features)
    assert y16.dtype == jnp.float32
    assert jnp.allclose(y16, y_ref, atol=5e-2, rtol=5e-2)

    print("KERNEL_OK")
</pallas_src>

<mosaic_0001>
module attributes {stable_mosaic.version = 11 : i64} {
  func.func @_linear_kernel_fused(%arg0: i32, %arg1: i32, %arg2: i32, %arg3: memref<8x32xf32, #tpu.memory_space<vmem>>, %arg4: memref<32x64xf32, #tpu.memory_space<vmem>>, %arg5: memref<1x64xf32, #tpu.memory_space<vmem>>, %arg6: memref<8x64xf32, #tpu.memory_space<vmem>>) attributes {dimension_semantics = [#tpu.dimension_semantics<parallel>, #tpu.dimension_semantics<parallel>, #tpu.dimension_semantics<arbitrary>], iteration_bounds = array<i64: 2, 1, 1>, scalar_prefetch = 0 : i64, scratch_operands = 0 : i64, tpu.core_type = #tpu.core_type<tc>, window_params = [{transform_indices = @transform_0, window_bounds = array<i64: 8, 32>}, {transform_indices = @transform_1, window_bounds = array<i64: 32, 64>}, {transform_indices = @transform_2, window_bounds = array<i64: 1, 64>}, {transform_indices = @transform_3, window_bounds = array<i64: 8, 64>}]} {
    %c0_i32 = arith.constant 0 : i32
    %0 = arith.cmpi eq, %arg2, %c0_i32 : i32
    %1 = arith.extui %0 : i1 to i32
    %c0_i32_0 = arith.constant 0 : i32
    %2 = arith.cmpi ne, %1, %c0_i32_0 : i32
    scf.if %2 {
      %c0_8 = arith.constant 0 : index
      %c0_9 = arith.constant 0 : index
      %9 = vector.load %arg5[%c0_8, %c0_9] : memref<1x64xf32, #tpu.memory_space<vmem>>, vector<1x64xf32>
      %10 = vector.shape_cast %9 : vector<1x64xf32> to vector<1x64xf32>
      %11 = vector.broadcast %10 : vector<1x64xf32> to vector<8x64xf32>
      %c0_10 = arith.constant 0 : index
      %c0_11 = arith.constant 0 : index
      %12 = vector.load %arg6[%c0_10, %c0_11] : memref<8x64xf32, #tpu.memory_space<vmem>>, vector<8x64xf32>
      tpu.vector_store %arg6[%c0_10, %c0_11], %11 {strides = array<i32>} : memref<8x64xf32, #tpu.memory_space<vmem>>, vector<8x64xf32>,
    } else {
    }
    %c0 = arith.constant 0 : index
    %c0_1 = arith.constant 0 : index
    %3 = vector.load %arg6[%c0, %c0_1] : memref<8x64xf32, #tpu.memory_space<vmem>>, vector<8x64xf32>
    %c0_2 = arith.constant 0 : index
    %c0_3 = arith.constant 0 : index
    %4 = vector.load %arg3[%c0_2, %c0_3] : memref<8x32xf32, #tpu.memory_space<vmem>>, vector<8x32xf32>
    %c0_4 = arith.constant 0 : index
    %c0_5 = arith.constant 0 : index
    %5 = vector.load %arg4[%c0_4, %c0_5] : memref<32x64xf32, #tpu.memory_space<vmem>>, vector<32x64xf32>
    %cst = arith.constant dense<0.000000e+00> : vector<8x64xf32>
    %6 = tpu.matmul %4, %5, %cst {dimension_numbers = #tpu.dot_dimension_numbers<[1], [0], [0], [1], [0, 0, 1, 1], [], []>, precision = #tpu.contract_precision<fp32>} : vector<8x32xf32>, vector<32x64xf32>, vector<8x64xf32> -> vector<8x64xf32>
    %7 = arith.addf %3, %6 : vector<8x64xf32>
    %c0_6 = arith.constant 0 : index
    %c0_7 = arith.constant 0 : index
    %8 = vector.load %arg6[%c0_6, %c0_7] : memref<8x64xf32, #tpu.memory_space<vmem>>, vector<8x64xf32>
    tpu.vector_store %arg6[%c0_6, %c0_7], %7 {strides = array<i32>} : memref<8x64xf32, #tpu.memory_space<vmem>>, vector<8x64xf32>,
    return
  }
  func.func @transform_0(%arg0: i32, %arg1: i32, %arg2: i32) -> (i32, i32) {
    %c0_i32 = arith.constant 0 : i32
    return %arg0, %arg2 : i32, i32
  }
  func.func @transform_1(%arg0: i32, %arg1: i32, %arg2: i32) -> (i32, i32) {
    %c0_i32 = arith.constant 0 : i32
    return %arg2, %arg1 : i32, i32
  }
  func.func @transform_2(%arg0: i32, %arg1: i32, %arg2: i32) -> (i32, i32) {
    %c0_i32 = arith.constant 0 : i32
    %c0_i32_0 = arith.constant 0 : i32
    return %c0_i32, %arg1 : i32, i32
  }
  func.func @transform_3(%arg0: i32, %arg1: i32, %arg2: i32) -> (i32, i32) {
    %c0_i32 = arith.constant 0 : i32
    return %arg0, %arg1 : i32, i32
  }
}

</mosaic_0001>

<bundles_post_ra>
// kernel: _linear_forward.1
= control target key start
LH: loop header
LB: loop body
LE: loop exit
PB: predicated region body
PF: predicated region fallthrough
CT: control target
= control target key end

     0   :  { %8 = vsyncpa [#allocation3], 0  ;;  %s1485_s0 = inlined_call_operand.hbm [shape: f32[16,32], index: 0, kind: input, shape index: {}]   ;;  %s1486_s1 = inlined_call_operand.hbm [shape: f32[32,64], index: 1, kind: input, shape index: {}]   ;;  %s1487_s2 = inlined_call_operand.vmem [shape: f32[1,64], index: 2, kind: input, shape index: {}]   ;;  %s1488_s3 = inlined_call_operand.hbm [shape: f32[16,64], index: 3, kind: output, shape index: {}]  }
   0x1   :  { %10 = vsyncpa [#allocation3 + $0x1], 0 }
   0x2   :  { %11 = vsyncpa [#allocation6], 0 }
   0x3   :  { %12 = vsyncpa [#allocation4], 0 }
   0x4   :  { %14 = vsyncpa [#allocation4 + $0x1], 0  ;;  %s1243_s12 = smov 0   ;;  %s1245_s13 = smov 0  }
   0x5   :  { %s1247_s14 = smov 0   ;;  %s1249_s15 = smov 0  }
   0x6   :  { %s1251_s16 = smov 0   ;;  %s1253_s17 = smov 0  }
   0x7 LB: > { %s886_s18 = sadd.s32 4294967295, %s1214_s17   ;;  %s887_s19 = sadd.s32 4294967294, %s1214_s17   ;;  %s1214_s17 = sphi %s1253_s17, %s20_s17   ;;  %s1210_s16 = sphi %s1251_s16, %s1506_s16   ;;  %s1206_s15 = sphi %s1249_s15, %s1505_s15   ;;  %s1202_s14 = sphi %s1247_s14, %s1504_s14   ;;  %s1198_s13 = sphi %s1245_s13, %s1503_s13   ;;  %s1194_s12 = sphi %s1243_s12, %s1502_s12  }
   0x8   : > { %p61_p0 = scmp.ne.s32.totalorder %s1198_s13, %s1194_s12  ;;  %p1277_p1 = scmp.eq.s32.totalorder %s886_s18, 0 }
   0x9   : > { %p1281_p2 = scmp.eq.s32.totalorder %s886_s18, 1  ;;  %p147_p3 = scmp.eq.s32.totalorder %s887_s19, 1 }
   0xa   : > { %p1287_p4 = por %p1277_p1, %p61_p0  ;;  %p888_p5 = scmp.ge.s32.totalorder %s1214_s17, 1 }
   0xb   : > { %p1292_p6 = por %p147_p3, %p61_p0  ;;  %p154_p7 = scmp.lt.s32.totalorder %s1214_s17, 3 }
   0xc   : > { %s1492_s22 = scalar_select %p1287_p4, 1, 0 }
   0xd   : > { %s1493_s23 = scalar_select %p1292_p6, 1, 0 }
   0xe   : > { %p1297_p8 = pnand %p888_p5, %p154_p7  ;;  %s1216_s25 = smov [#allocation5]  }
   0xf   : > { %s170_s26 = sshll.u32 %s1216_s25, 4  ;;  %s39_s28 = sadd.s32 1, %s1210_s16  ;;  %s171_s26 = int_to_ptr.vmem [resolvable:$true] %s170_s26 }
  0x10   : > { %p1007_p9 = pneg %p1297_p8  ;;  %s1087_s29 = scalar_lea.vmem %s171_s26, 512 }
  0x11   : > { %p1088_p13 = scmp.ne.s32.totalorder %s171_s26, %s1087_s29  ;;  %p1095_p5 = scmp.lt.s32.totalorder %s171_s26, %s171_s26 }
  0x12   : > { %p1306_p11 = pnand %p1007_p9, %p1277_p1  ;;  %p1096_p7 = scmp.lt.s32.totalorder %s1087_s29, %s1087_s29 }
  0x14   : > { %p1078_p12 = pneg %p1306_p11  ;;  %p1097_p6 = por %p1096_p7, %p1095_p5 }
  0x16   : > { %p1090_p0 = pnand %p1088_p13, %p1078_p12 }
  0x18   : > { %p1091_p3 = pneg %p1090_p0 }
  0x1a   : > { %p1098_p4 = pnand %p1097_p6, %p1091_p3 }
  0x1c   : > { %1101 = shalt.err (!%p1098_p4)
}
  0x1d   : > { %s1217_s30 = smov 128   ;;  %s1218_s4 = smov 8  }
  0x1e   : > { %1010 = dma.hbm_to_vmem [thread:$0]  (!%p1306_p11), %s1486_s1, 512, %s171_s26, [#allocation6], %s1217_s30, %s1217_s30, %s1218_s4  }
  0x1f   : > { %p41_p6 = scmp.ge.s32.totalorder %s39_s28, 2  ;;  %s48_s7 = sadd.s32 1, %s1202_s14 }
  0x20   : > { %p55_p4 = scmp.ne.s32.totalorder %s1202_s14, %s1198_s13  ;;  %p56_p9 = scmp.eq.s32.totalorder %s1214_s17, 0 }
  0x21   : > { %s1508_s28 = smov (%p41_p6, %s39_s28), 0  ;;  %p1020_p0 = scmp.lt.s32.totalorder %s1214_s17, 2 }
  0x22   : > { %p1324_p12 = por %p56_p9, %p55_p4  ;;  %p1330_p13 = por %p1281_p2, %p55_p4 }
  0x23   : > { %s43_s10 = ssub.s32 %s1210_s16, %s1508_s28  ;;  %s190_s11 = sand.u32 1, %s1202_s14  }
  0x24   : > { %p46_p11 = scmp.eq.s32.totalorder %s43_s10, 0  ;;  %s892_s18 = sshll.u32 %s190_s11, 3 }
  0x25   : > { %s893_s25 = sshll.u32 %s1210_s16, 7  ;;  %s194_s30 = scalar_lea.vmem [#allocation2], %s892_s18 }
  0x26   : > { %s1339_s19 = scalar_select %p46_p11, %s1202_s14, %s48_s7  }
  0x27   : > { %s200_s29 = scalar_lea.hbm %s1485_s0, %s893_s25  ;;  %s202_s4 = sshll.u32 %s194_s30, 4  ;;  %s203_s4 = int_to_ptr.vmem [resolvable:$true] %s202_s4 }
  0x28   : > { %p1347_p2 = pnand %p1020_p0, %p1324_p12  ;;  %s191_s5 = scalar_lea.sflag [#allocation3], %s190_s11 }
  0x29   : > { %s1115_s6 = scalar_lea.vmem %s203_s4, 128  ;;  %s1219_s7 = smov [#allocation2]  }
  0x2a   : > { %p1104_p3 = pneg %p1347_p2  ;;  %p1116_p5 = scmp.ne.s32.totalorder %s203_s4, %s1115_s6 }
  0x2b   : > { %s1120_s10 = sshll.u32 %s1219_s7, 4  ;;  %s1121_s10 = int_to_ptr.vmem [resolvable:$false] %s1120_s10 }
  0x2c   : > { %p1118_p7 = pnand %p1116_p5, %p1104_p3  ;;  %s1122_s25 = scalar_lea.vmem %s1121_s10, 256 }
  0x2d   : > { %p1123_p4 = scmp.lt.s32.totalorder %s203_s4, %s1121_s10  ;;  %p1124_p9 = scmp.lt.s32.totalorder %s1122_s25, %s1115_s6 }
  0x2e   : > { %p1119_p6 = pneg %p1118_p7 }
  0x2f   : > { %p1125_p11 = por %p1124_p9, %p1123_p4 }
  0x31   : > { %p1126_p10 = pnand %p1125_p11, %p1119_p6 }
  0x33   : > { %1129 = shalt.err (!%p1126_p10)
}
  0x34   : > { %1014 = dma.hbm_to_vmem [thread:$0]  (!%p1347_p2), %s200_s29, 128, %s203_s4, %s191_s5  }
  0x35   : > { %211 = sbr.rel (%p1297_p8) target bundleno = 309 (0x135), region = 32  ;;  %s1358_s8 = sand.u32 (!%p1297_p8), 1, %s1198_s13  }
  0x36   : > { %s895_s11 = sshll.u32 (!%p1297_p8), %s1358_s8, 3  ;;  %s214_s18 = scalar_lea.sflag (!%p1297_p8), [#allocation3], %s1358_s8 }
  0x37   : > { %s217_s26 = scalar_lea.vmem (!%p1297_p8), [#allocation2], %s895_s11  ;;  %p1499_p12 = scmp.ne.s32.totalorder (!%p1297_p8), %s1492_s22, 0 }
  0x3a   : > { %1181 = dma.done.wait (%p1499_p12), %s214_s18, 128  }
  0x3b   : > { %1183 = vsyncadd (%p1499_p12), %s214_s18, 4294967168 }
  0x3c   : > { %1185 = dma.done.wait (%p1277_p1), [#allocation6], 512  }
  0x3d   : > { %1187 = vsyncadd (%p1277_p1), [#allocation6], 4294966784  ;;  %v1220_v0 = vmov 0.0   ;;  %vm1221_vm0 = vmmov 0   ;;  %vm270_vm1 = vcmask 261120   ;;  %v269_v1 = vld [vmem:[#allocation5 + $0x18] sm:$0xff] }
  0x3e   : > { %933 = vmatprep.subr.mxu0 %v1220_v0  ;;  %944 = vmatprep.subr.mxu1 %v1220_v0  ;;  %v268_v2 = vld [vmem:[#allocation5 + $0x10] sm:$0xff]  ;;  %v267_v3 = vld [vmem:[#allocation5 + $0x8] sm:$0xff]  ;;  %v1378_v4 = vand.u32 4294901760, %v269_v1  ;;  %v266_v7 = vld [vmem:[#allocation5] sm:$0xff]  ;;  %vm262_vm2 = vcmask 523264   ;;  %s246_s24 = scalar_lea.vmem [#allocation7], %s895_s11 }
  0x3f   : > { %941 = vmatprep.mubr.msk.f32.mxu0 %vm1221_vm0, %v1220_v0  ;;  %952 = vmatprep.mubr.msk.f32.mxu1 %vm1221_vm0, %v1220_v0  ;;  %v1380_v5 = vand.u32 4294901760, %v268_v2  ;;  %v1382_v6 = vand.u32 4294901760, %v267_v3  ;;  %v265_v8 = vld [vmem:[%s217_s26] sm:$0xff]  ;;  %v1384_v9 = vand.u32 4294901760, %v266_v7  ;;  %s900_s27 = sshll.u32 %s1206_s15, 7  ;;  %s777_s29 = sshll.u32 %s246_s24, 4  ;;  %s778_s29 = int_to_ptr.vmem [resolvable:$true] %s777_s29 }
  0x40   : > { %v272_v10 = vsel %vm270_vm1, %v265_v8, 0  ;;  %934 = vmatpush3.msra.mxu0 %v1378_v4  ;;  %v379_v11 = vsub.f32 %v269_v1, %v1378_v4  ;;  %v898_v32 = vld [vmem:[%s1487_s2] ss:$0 sm:$0xff]  ;;  %s775_s21 = scalar_lea.hbm %s1488_s3, %s900_s27  ;;  %s763_s5 = scalar_lea.sflag [#allocation4], %s1358_s8 }
  0x41   : > { %v1388_v12 = vand.u32 4294901760, %v272_v10  ;;  %v386_v13 = vsub.f32 %v268_v2, %v1380_v5  ;;  %v393_v14 = vsub.f32 %v267_v3, %v1382_v6  ;;  %935 = vmatprep.subr.mxu0 %v1220_v0  ;;  %v400_v15 = vsub.f32 %v266_v7, %v1384_v9  ;;  %263 = vst.msk [vmem:[%s246_s24] sm:$0xff] %vm262_vm2, %v898_v32  ;;  %s1130_s6 = scalar_lea.vmem %s778_s29, 128  ;;  %s1222_s7 = smov [#allocation7]  }
  0x42   : > { %936 = vmatpush3.msra.mxu0 %v1380_v5  ;;  %v380_v16 = vand.u32 4294901760, %v379_v11  ;;  %p1131_p1 = scmp.ne.s32.totalorder %s778_s29, %s1130_s6  ;;  %s1134_s10 = sshll.u32 %s1222_s7, 4  ;;  %s1135_s10 = int_to_ptr.vmem [resolvable:$false] %s1134_s10 }
  0x43   : > { %v344_v17 = vsub.f32 %v272_v10, %v1388_v12  ;;  %v387_v18 = vand.u32 4294901760, %v386_v13  ;;  %v394_v19 = vand.u32 4294901760, %v393_v14  ;;  %937 = vmatprep.subr.mxu0 %v1220_v0  ;;  %v401_v20 = vand.u32 4294901760, %v400_v15  ;;  %s1136_s15 = scalar_lea.vmem %s1135_s10, 256  ;;  %p1137_p0 = scmp.lt.s32.totalorder %s778_s29, %s1135_s10 }
  0x44   : > { %938 = vmatpush3.msra.mxu0 %v1382_v6  ;;  %v381_v21 = vsub.f32 %v379_v11, %v380_v16  ;;  %p1132_p8 = pnand %p1131_p1, %p1330_p13  ;;  %p1138_p2 = scmp.lt.s32.totalorder %s1136_s15, %s1130_s6 }
  0x45   : > { %v345_v22 = vand.u32 4294901760, %v344_v17  ;;  %v388_v23 = vsub.f32 %v386_v13, %v387_v18  ;;  %v395_v24 = vsub.f32 %v393_v14, %v394_v19  ;;  %939 = vmatprep.subr.mxu0 %v1220_v0  ;;  %v402_v28 = vsub.f32 %v400_v15, %v401_v20 }
  0x46   : > { %940 = vmatpush3.msra.mxu0 %v1384_v9  ;;  %v382_v25 = vand.u32 4294901760, %v381_v21  ;;  %p1133_p10 = pneg %p1132_p8  ;;  %p1139_p3 = por %p1138_p2, %p1137_p0 }
  0x47   : > { %v346_v26 = vsub.f32 %v344_v17, %v345_v22  ;;  %v389_v27 = vand.u32 4294901760, %v388_v23  ;;  %955 = vmatprep.subr.mxu0 %v1220_v0  ;;  %v396_v30 = vand.u32 4294901760, %v395_v24  ;;  %v403_v31 = vand.u32 4294901760, %v402_v28 }
  0x48   : > { %945 = vmatpush3.msra.mxu1 %v382_v25  ;;  %v264_v47 = vld [vmem:[%s246_s24] sm:$0xff]  ;;  %p1140_p5 = pnand %p1139_p3, %p1133_p10 }
  0x49   : > { %v347_v29 = vand.u32 4294901760, %v346_v26  ;;  %946 = vmatprep.subr.mxu1 %v1220_v0 }
  0x4a   : > { %947 = vmatpush3.msra.mxu1 %v389_v27 }
  0x4b   : > { %942 = vmatmul.mubr.f32.vlgmr.msra.gmra.mxu0 %v347_v29  ;;  %948 = vmatprep.subr.mxu1 %v1220_v0 }
  0x4c   : > { %956 = vmatpush3.msra.mxu0 %v379_v11  ;;  %949 = vmatpush3.msra.mxu1 %v396_v30 }
  0x4d   : > { %957 = vmatprep.subr.mxu0 %v1220_v0  ;;  %950 = vmatprep.subr.mxu1 %v1220_v0 }
  0x4e   : > { %958 = vmatpush3.msra.mxu0 %v386_v13  ;;  %951 = vmatpush3.msra.mxu1 %v403_v31 }
  0x4f   : > { %959 = vmatprep.subr.mxu0 %v1220_v0  ;;  %953 = vmatmul.mubr.f32.vlgmr.msra.gmra.mxu1 %v1388_v12 }
  0x50   : > { %960 = vmatpush3.msra.mxu0 %v393_v14  ;;  %966 = vmatprep.subr.mxu1 %v1220_v0 }
  0x51   : > { %961 = vmatprep.subr.mxu0 %v1220_v0  ;;  %963 = vmatprep.mubr.msk.f32.mxu0 %vm1221_vm0, %v1220_v0 }
  0x52   : > { %962 = vmatpush3.msra.mxu0 %v400_v15  ;;  %967 = vmatpush3.msra.mxu1 %v1378_v4 }
  0x53   : > { %964 = vmatmul.mubr.f32.vlgmr.msra.gmra.mxu0 %v344_v17  ;;  %968 = vmatprep.subr.mxu1 %v1220_v0 }
  0x54   : > { %977 = vmatprep.subr.mxu0 %v1220_v0  ;;  %969 = vmatpush3.msra.mxu1 %v1380_v5 }
  0x55   : > { %978 = vmatpush3.msra.mxu0 %v380_v16  ;;  %970 = vmatprep.subr.mxu1 %v1220_v0 }
  0x56   : > { %979 = vmatprep.subr.mxu0 %v1220_v0  ;;  %971 = vmatpush3.msra.mxu1 %v1382_v6 }
  0x57   : > { %980 = vmatpush3.msra.mxu0 %v387_v18  ;;  %972 = vmatprep.subr.mxu1 %v1220_v0 }
  0x58   : > { %981 = vmatprep.subr.mxu0 %v1220_v0  ;;  %973 = vmatpush3.msra.mxu1 %v1384_v9 }
  0x59   : > { %974 = vmatprep.mubr.msk.f32.mxu1 %vm1221_vm0, %v1220_v0  ;;  %982 = vmatpush3.msra.mxu0 %v394_v19 }
  0x5a   : > { %975 = vmatmul.mubr.f32.vlgmr.msra.gmra.mxu1 %v345_v22  ;;  %983 = vmatprep.subr.mxu0 %v1220_v0 }
  0x5b   : > { %988 = vmatprep.subr.mxu1 %v1220_v0  ;;  %984 = vmatpush3.msra.mxu0 %v401_v20 }
  0x5c   : > { %985 = vmatprep.mubr.msk.f32.mxu0 %vm1221_vm0, %v1220_v0  ;;  %989 = vmatpush3.msra.mxu1 %v1378_v4 }
  0x5d   : > { %986 = vmatmul.mubr.f32.vlgmr.msra.gmra.mxu0 %v1388_v12  ;;  %990 = vmatprep.subr.mxu1 %v1220_v0 }
  0x5e   : > { %996 = vmatprep.mubr.msk.f32.mxu1 %vm1221_vm0, %v1220_v0  ;;  %991 = vmatpush3.msra.mxu1 %v1380_v5 }
  0x5f   : > { %992 = vmatprep.subr.mxu1 %v1220_v0 }
  0x60   : > { %993 = vmatpush3.msra.mxu1 %v1382_v6 }
  0x61   : > { %994 = vmatprep.subr.mxu1 %v1220_v0 }
  0x62   : > { %995 = vmatpush3.msra.mxu1 %v1384_v9 }
  0x63   : > { %997 = vmatmul.mubr.f32.vlgmr.msra.gmra.mxu1 %v1388_v12 }
 0x10b   : > { %v349_v33 = vpop.f32.mrf.mxu0 }
 0x10d   : > { %v943_v34 = vpop.f32.mrf.mxu0 }
 0x10f   : > { %v440_v35 = vpop.f32.mrf.mxu1 }
 0x110   : > { %v441_v39 = vadd.f32 %v440_v35, %v349_v33 }
 0x111   : > { %v954_v36 = vpop.f32.mrf.mxu1 }
 0x113   : > { %v520_v37 = vpop.f32.mrf.mxu0 }
 0x114   : > { %v521_v42 = vadd.f32 %v520_v37, %v441_v39 }
 0x115   : > { %v965_v38 = vpop.f32.mrf.mxu0 }
 0x11a   : > { %v597_v40 = vpop.f32.mrf.mxu1 }
 0x11b   : > { %v598_v44 = vadd.f32 %v597_v40, %v521_v42 }
 0x11c   : > { %v976_v41 = vpop.f32.mrf.mxu1 }
 0x11d   : > { %v680_v43 = vpop.f32.mrf.mxu0 }
 0x11e   : > { %v681_v46 = vadd.f32 %v680_v43, %v598_v44 }
 0x11f   : > { %v987_v45 = vpop.f32.mrf.mxu0 }
 0x123   : > { %v755_v48 = vpop.f32.mrf.mxu1 }
 0x124   : > { %v756_v49 = vadd.f32 %v755_v48, %v681_v46 }
 0x125   : > { %v998_v50 = vpop.f32.mrf.mxu1 }
 0x126   : > { %v759_v51 = vadd.f32 %v756_v49, %v264_v47 }
 0x128   : > { %761 = vst.msk [vmem:[%s246_s24] sm:$0xff] %vm262_vm2, %v759_v51 }
 0x129   : > { %1143 = shalt.err (!%p1140_p5)
}
 0x12a   : > { %s1144_s25 = scalar_lea.hbm %s775_s21, 128  ;;  %s1148_s18 = scalar_lea.hbm %s1488_s3, 256 }
 0x12b   : > { %p1145_p7 = scmp.ne.s32.totalorder %s775_s21, %s1144_s25  ;;  %p1149_p9 = scmp.lt.s32.totalorder %s775_s21, %s1488_s3 }
 0x12c   : > { %p1150_p11 = scmp.lt.s32.totalorder %s1148_s18, %s1144_s25 }
 0x12d   : > { %p1146_p6 = pnand %p1145_p7, %p1330_p13 }
 0x12e   : > { %p1151_p12 = por %p1150_p11, %p1149_p9 }
 0x12f   : > { %p1147_p4 = pneg %p1146_p6 }
 0x131   : > { %p1152_p1 = pnand %p1151_p12, %p1147_p4 }
 0x133   : > { %1155 = shalt.err (!%p1152_p1)
}
 0x134   : > { %1005 = dma.vmem_to_hbm [thread:$0]  (%p1330_p13), %s778_s29, 128, %s775_s21, %s763_s5  }
 0x135 PF: > { %s789_s22 = sand.u32 1, %s1194_s12   ;;  %p1500_p8 = scmp.ne.s32.totalorder %s1493_s23, 0 }
 0x136   : > { %p1501_p10 = scmp.ge.s32.totalorder %s1214_s17, 2  ;;  %s790_s24 = scalar_lea.sflag [#allocation4], %s789_s22 }
 0x138   : > { %p1016_p0 = pnand %p1501_p10, %p1500_p8 }
 0x13a   : > { %p1017_p2 = pneg %p1016_p0 }
 0x13c   : > { %1189 = dma.done.wait (%p1017_p2), %s790_s24, 128  }
 0x13d   : > { %1191 = vsyncadd (%p1017_p2), %s790_s24, 4294967168  ;;  %s20_s17 = sadd.s32 1, %s1214_s17   ;;  %s1502_s12 = smov %s1198_s13 }
 0x13e   : > { %p17_p3 = scmp.ge.s32.totalorder %s20_s17, 4   ;;  %s1503_s13 = smov %s1202_s14 }
 0x13f   : > { %s1504_s14 = smov %s1339_s19  ;;  %s1505_s15 = smov %s1210_s16 }
 0x140   : > { %s1506_s16 = smov %s1508_s28  ;;  %19 = sbr.rel (!%p17_p3) target bundleno = 7 (0x7), region = 89 }
 0x145   :  { %795 = vsyncpa [#allocation3], 1 }
 0x146   :  { %797 = vsyncpa [#allocation3 + $0x1], 1 }
 0x147   :  { %798 = vsyncpa [#allocation6], 1 }
 0x148   :  { %799 = vsyncpa [#allocation4], 1 }
 0x149   :  { %801 = vsyncpa [#allocation4 + $0x1], 1 }

</bundles_post_ra>
